<compile_context>
chip_gen: v5e
topology: v5e:2x2
jax: 0.10.0
libtpu: 0.0.40
codegen_flags: <defaults>
</compile_context>

<pallas_src>
import math

import jax
import jax.numpy as jnp
from jax import lax
from jax.experimental import pallas as pl
from jax.experimental.pallas import tpu as pltpu


def _round_up(x, m):
    return ((x + m - 1) // m) * m


def _backbone_update_kernel(s_ref, w_ref, bias_ref, o_ref):
    # s_ref:    (TM, c_s)  residues x channels (native dtype)
    # w_ref:    (6, c_s)   nn.Linear weight, PyTorch (out, in) layout
    # bias_ref: (6, 1)     nn.Linear bias (f32)
    # o_ref:    (12, TM)   sublane k = element k of the row-major 3x4 top
    #                      block [R | t], lanes = residues.
    #
    # xT = W @ s^T: contract the channel dim of both operands -> (6, TM) so
    # every downstream intermediate is lane-dense (residues on lanes).
    # TODO(synk): confirm with pl.lower_as_mlir that this transposed-RHS
    #   dot_general does not insert an XLU relayout of the (TM, c_s) tile;
    #   if it does, switch to a form that avoids it.
    x = lax.dot_general(
        w_ref[...], s_ref[...],
        dimension_numbers=(((1,), (1,)), ((), ())),
        preferred_element_type=jnp.float32)
    x = x + bias_ref[...]                          # (6,1) broadcast over lanes

    v = x[0:3, :]                                  # (b, c, d) quaternion imag
    t = x[3:6, :]                                  # (tx, ty, tz)

    # Pre-normalization quaternion is (1, b, c, d); every rotation entry is
    # quadratic in the normalized quaternion, so scale once by
    # inv = 1 / |q|^2 = 1 / (1 + b^2 + c^2 + d^2) instead of normalizing.
    # All algebra is batched across sublanes as (3, TM) ops.
    sq = v * v                                     # (bb, cc, dd)
    ssum = sq[0:1, :] + sq[1:2, :] + sq[2:3, :]    # bb + cc + dd       (1, TM)
    denom = 1.0 + ssum
    inv = pl.reciprocal(denom, approx=True)        # EUP slot
    inv = inv * (2.0 - denom * inv)                # one Newton step -> f32 acc
    inv2 = inv + inv

    diag = (2.0 * sq + (1.0 - ssum)) * inv         # (r00, r11, r22)

    vshift = jnp.concatenate([x[1:3, :], x[0:1, :]], axis=0)   # (c, d, b)
    vprev = jnp.concatenate([x[2:3, :], x[0:2, :]], axis=0)    # (d, b, c)
    cross = v * vshift                             # (bc, cd, db)
    plus = (cross + vprev) * inv2                  # (r10, r21, r02)
    minus = (cross - vprev) * inv2                 # (r01, r12, r20)

    # Row-major flattened 3x4 top block [R | t], stacked along sublanes.
    T = jnp.concatenate(
        [diag[0:1], minus[0:1], plus[2:3], t[0:1],
         plus[0:1], diag[1:2], minus[1:2], t[1:2],
         minus[2:3], plus[1:2], diag[2:3], t[2:3]],
        axis=0)                                    # (12, TM)
    # Lanes past the valid rows of a ragged last tile hold garbage; Pallas
    # masks them on the store.
    o_ref[...] = T.astype(o_ref.dtype)


def backbone_update(s, weight, bias, *, tm=8192, out_dtype=None):
    """
    Args:
      s:        (*, N_res, c_s) single representation (any float dtype).
      weight:   (6, c_s)  nn.Linear weight (out x in, PyTorch layout).
      bias:     (6,)      nn.Linear bias.
      tm:       residues per grid step; multiple of 128. Default 8192 fits all
                generations' default scoped VMEM; sweep up to 16384 on v6e/v7x.
      out_dtype: output dtype (default: s.dtype).
    Returns:
      (*, N_res, 4, 4) backbone transforms.
    """
    *batch, n_res, c_s = s.shape
    out_dtype = s.dtype if out_dtype is None else jnp.dtype(out_dtype)
    rows = math.prod(batch) * n_res
    s2d = s.reshape(rows, c_s)                     # no upcast, no pad

    if rows <= 128:
        tm_eff = rows                              # single full-extent block
    else:
        assert tm % 128 == 0, "tm must be a multiple of 128"
        # Cap at ceil(rows/2) rounded to 128 so grid >= 2 (both v7x TCs busy).
        half = _round_up((rows + 1) // 2, 128)
        tm_eff = max(128, min(tm, half))
    grid = pl.cdiv(rows, tm_eff)

    # Policy: weights in activation dtype (native MXU path), bias in f32,
    # f32 accumulation inside the kernel.
    w = weight.astype(s.dtype)                     # (6, c_s), tiny
    b2d = bias.astype(jnp.float32).reshape(6, 1)   # (6, 1), keep f32

    isz = jnp.dtype(s.dtype).itemsize
    osz = jnp.dtype(out_dtype).itemsize
    cost = pl.CostEstimate(
        flops=2 * rows * c_s * 6 + 40 * rows,
        transcendentals=rows,
        bytes_accessed=rows * c_s * isz + 12 * rows * osz + 6 * c_s * isz)

    out12 = pl.pallas_call(
        _backbone_update_kernel,
        out_shape=jax.ShapeDtypeStruct((12, rows), out_dtype),
        grid_spec=pltpu.PrefetchScalarGridSpec(
            num_scalar_prefetch=0,
            grid=(grid,),
            in_specs=[
                pl.BlockSpec((tm_eff, c_s), lambda i: (i, 0)),
                pl.BlockSpec((6, c_s), lambda i: (0, 0)),
                pl.BlockSpec((6, 1), lambda i: (0, 0)),
            ],
            out_specs=pl.BlockSpec((12, tm_eff), lambda i: (0, i)),
        ),
        compiler_params=pltpu.CompilerParams(
            dimension_semantics=("parallel",)),
        cost_estimate=cost,
    )(s2d, w, b2d)

    # (12, R) -> (R, 3, 4) top block; append the constant [0,0,0,1] bottom row
    # in the wrapper (XLA fuses the broadcast/concat with the transpose copy).
    top = out12.T.reshape(*batch, n_res, 3, 4)
    bottom = jnp.broadcast_to(
        jnp.array([0.0, 0.0, 0.0, 1.0], dtype=out_dtype),
        (*batch, n_res, 1, 4))
    return jnp.concatenate([top, bottom], axis=-2)


def _reference(s, weight, bias):
    """Pure-JAX reference mirroring the PyTorch forward."""
    x = jnp.einsum("...i,oi->...o", s.astype(jnp.float32),
                   weight.astype(jnp.float32)) + bias.astype(jnp.float32)
    quat = jnp.concatenate(
        [jnp.ones(x.shape[:-1] + (1,), dtype=x.dtype), x[..., :3]], axis=-1)
    t = x[..., 3:]
    quat = quat / jnp.linalg.norm(quat, axis=-1, keepdims=True)
    a, b, c, d = (quat[..., i] for i in range(4))
    R = jnp.stack([
        jnp.stack([a * a + b * b - c * c - d * d, 2 * (b * c - a * d), 2 * (b * d + a * c)], -1),
        jnp.stack([2 * (b * c + a * d), a * a - b * b + c * c - d * d, 2 * (c * d - a * b)], -1),
        jnp.stack([2 * (b * d - a * c), 2 * (c * d + a * b), a * a - b * b - c * c + d * d], -1),
    ], -2)
    top = jnp.concatenate([R, t[..., None]], axis=-1)
    bottom = jnp.broadcast_to(
        jnp.array([0.0, 0.0, 0.0, 1.0], dtype=x.dtype),
        x.shape[:-1] + (1, 4))
    return jnp.concatenate([top, bottom], axis=-2).astype(s.dtype)


if __name__ == "__main__":
    key = jax.random.PRNGKey(0)
    k_s, k_w, k_b, k_s2, k_s3 = jax.random.split(key, 5)

    c_s = 32
    bound = 1.0 / (c_s ** 0.5)
    weight = jax.random.uniform(k_w, (6, c_s), jnp.float32, -bound, bound)
    bias = jax.random.uniform(k_b, (6,), jnp.float32, -bound, bound)

    # Small case: single block (grid == 1, full-extent tile).
    s = jax.random.normal(k_s, (2, 8, c_s), jnp.float32)
    out = jax.block_until_ready(backbone_update(s, weight, bias))
    assert out.shape == (2, 8, 4, 4), out.shape
    ref = _reference(s, weight, bias)
    err = float(jnp.max(jnp.abs(out - ref)))
    assert jnp.allclose(out, ref, atol=1e-5, rtol=1e-5), err

    # Multi-block case with a ragged last tile (grid=3, output masking path).
    s2 = jax.random.normal(k_s2, (3, 100, c_s), jnp.float32)   # rows = 300
    out2 = jax.block_until_ready(backbone_update(s2, weight, bias, tm=128))
    assert out2.shape == (3, 100, 4, 4), out2.shape
    ref2 = _reference(s2, weight, bias)
    err2 = float(jnp.max(jnp.abs(out2 - ref2)))
    assert jnp.allclose(out2, ref2, atol=1e-5, rtol=1e-5), err2

    # Default-tm case exercising the grid>=2 split (rows=1400 -> tm_eff=768,
    # grid=2, ragged last tile).
    s3 = jax.random.normal(k_s3, (2, 700, c_s), jnp.float32)
    out3 = jax.block_until_ready(backbone_update(s3, weight, bias))
    assert out3.shape == (2, 700, 4, 4), out3.shape
    ref3 = _reference(s3, weight, bias)
    err3 = float(jnp.max(jnp.abs(out3 - ref3)))
    assert jnp.allclose(out3, ref3, atol=1e-5, rtol=1e-5), err3

    print("KERNEL_OK")
</pallas_src>

<mosaic_0001>
module attributes {stable_mosaic.version = 11 : i64} {
  func.func @_backbone_update_kernel(%arg0: i32, %arg1: memref<16x32xf32, #tpu.memory_space<vmem>>, %arg2: memref<6x32xf32, #tpu.memory_space<vmem>>, %arg3: memref<6x1xf32, #tpu.memory_space<vmem>>, %arg4: memref<12x16xf32, #tpu.memory_space<vmem>>) attributes {dimension_semantics = [#tpu.dimension_semantics<parallel>], iteration_bounds = array<i64: 1>, scalar_prefetch = 0 : i64, scratch_operands = 0 : i64, tpu.core_type = #tpu.core_type<tc>, window_params = [{transform_indices = @transform_0, window_bounds = array<i64: 16, 32>}, {pipeline_mode = #tpu.pipeline_mode<synchronous>, transform_indices = @transform_1, window_bounds = array<i64: 6, 32>}, {pipeline_mode = #tpu.pipeline_mode<synchronous>, transform_indices = @transform_2, window_bounds = array<i64: 6, 1>}, {transform_indices = @transform_3, window_bounds = array<i64: 12, 16>}]} {
    %c0 = arith.constant 0 : index
    %c0_0 = arith.constant 0 : index
    %0 = vector.load %arg2[%c0, %c0_0] : memref<6x32xf32, #tpu.memory_space<vmem>>, vector<6x32xf32>
    %c0_1 = arith.constant 0 : index
    %c0_2 = arith.constant 0 : index
    %1 = vector.load %arg1[%c0_1, %c0_2] : memref<16x32xf32, #tpu.memory_space<vmem>>, vector<16x32xf32>
    %cst = arith.constant dense<0.000000e+00> : vector<6x16xf32>
    %2 = tpu.matmul %0, %1, %cst {dimension_numbers = #tpu.dot_dimension_numbers<[1], [1], [0], [0], [0, 0, 1, 0], [], []>} : vector<6x32xf32>, vector<16x32xf32>, vector<6x16xf32> -> vector<6x16xf32>
    %c0_3 = arith.constant 0 : index
    %c0_4 = arith.constant 0 : index
    %3 = vector.load %arg3[%c0_3, %c0_4] : memref<6x1xf32, #tpu.memory_space<vmem>>, vector<6x1xf32>
    %4 = vector.broadcast %3 : vector<6x1xf32> to vector<6x16xf32>
    %5 = arith.addf %2, %4 : vector<6x16xf32>
    %6 = vector.extract_strided_slice %5 {offsets = [0, 0], sizes = [3, 16], strides = [1, 1]} : vector<6x16xf32> to vector<3x16xf32>
    %7 = vector.extract_strided_slice %5 {offsets = [3, 0], sizes = [3, 16], strides = [1, 1]} : vector<6x16xf32> to vector<3x16xf32>
    %8 = arith.mulf %6, %6 : vector<3x16xf32>
    %9 = vector.extract_strided_slice %8 {offsets = [0, 0], sizes = [1, 16], strides = [1, 1]} : vector<3x16xf32> to vector<1x16xf32>
    %10 = vector.extract_strided_slice %8 {offsets = [1, 0], sizes = [1, 16], strides = [1, 1]} : vector<3x16xf32> to vector<1x16xf32>
    %11 = arith.addf %9, %10 : vector<1x16xf32>
    %12 = vector.extract_strided_slice %8 {offsets = [2, 0], sizes = [1, 16], strides = [1, 1]} : vector<3x16xf32> to vector<1x16xf32>
    %13 = arith.addf %11, %12 : vector<1x16xf32>
    %cst_5 = arith.constant 1.000000e+00 : f32
    %14 = vector.broadcast %cst_5 : f32 to vector<1x16xf32>
    %15 = arith.addf %14, %13 : vector<1x16xf32>
    %16 = tpu.reciprocal %15 {approx = true} : vector<1x16xf32> -> vector<1x16xf32>
    %17 = arith.mulf %15, %16 : vector<1x16xf32>
    %cst_6 = arith.constant 2.000000e+00 : f32
    %18 = vector.broadcast %cst_6 : f32 to vector<1x16xf32>
    %19 = arith.subf %18, %17 : vector<1x16xf32>
    %20 = arith.mulf %16, %19 : vector<1x16xf32>
    %21 = arith.addf %20, %20 : vector<1x16xf32>
    %cst_7 = arith.constant 2.000000e+00 : f32
    %22 = vector.broadcast %cst_7 : f32 to vector<3x16xf32>
    %23 = arith.mulf %22, %8 : vector<3x16xf32>
    %cst_8 = arith.constant 1.000000e+00 : f32
    %24 = vector.broadcast %cst_8 : f32 to vector<1x16xf32>
    %25 = arith.subf %24, %13 : vector<1x16xf32>
    %26 = vector.broadcast %25 : vector<1x16xf32> to vector<3x16xf32>
    %27 = arith.addf %23, %26 : vector<3x16xf32>
    %28 = vector.broadcast %20 : vector<1x16xf32> to vector<3x16xf32>
    %29 = arith.mulf %27, %28 : vector<3x16xf32>
    %30 = vector.extract_strided_slice %5 {offsets = [1, 0], sizes = [2, 16], strides = [1, 1]} : vector<6x16xf32> to vector<2x16xf32>
    %31 = vector.extract_strided_slice %5 {offsets = [0, 0], sizes = [1, 16], strides = [1, 1]} : vector<6x16xf32> to vector<1x16xf32>
    %32 = tpu.concatenate %30, %31 in 0 : vector<2x16xf32>, vector<1x16xf32> -> vector<3x16xf32>
    %33 = vector.extract_strided_slice %5 {offsets = [2, 0], sizes = [1, 16], strides = [1, 1]} : vector<6x16xf32> to vector<1x16xf32>
    %34 = vector.extract_strided_slice %5 {offsets = [0, 0], sizes = [2, 16], strides = [1, 1]} : vector<6x16xf32> to vector<2x16xf32>
    %35 = tpu.concatenate %33, %34 in 0 : vector<1x16xf32>, vector<2x16xf32> -> vector<3x16xf32>
    %36 = arith.mulf %6, %32 : vector<3x16xf32>
    %37 = arith.addf %36, %35 : vector<3x16xf32>
    %38 = vector.broadcast %21 : vector<1x16xf32> to vector<3x16xf32>
    %39 = arith.mulf %37, %38 : vector<3x16xf32>
    %40 = arith.subf %36, %35 : vector<3x16xf32>
    %41 = vector.broadcast %21 : vector<1x16xf32> to vector<3x16xf32>
    %42 = arith.mulf %40, %41 : vector<3x16xf32>
    %43 = vector.extract_strided_slice %29 {offsets = [0, 0], sizes = [1, 16], strides = [1, 1]} : vector<3x16xf32> to vector<1x16xf32>
    %44 = vector.extract_strided_slice %42 {offsets = [0, 0], sizes = [1, 16], strides = [1, 1]} : vector<3x16xf32> to vector<1x16xf32>
    %45 = vector.extract_strided_slice %39 {offsets = [2, 0], sizes = [1, 16], strides = [1, 1]} : vector<3x16xf32> to vector<1x16xf32>
    %46 = vector.extract_strided_slice %7 {offsets = [0, 0], sizes = [1, 16], strides = [1, 1]} : vector<3x16xf32> to vector<1x16xf32>
    %47 = vector.extract_strided_slice %39 {offsets = [0, 0], sizes = [1, 16], strides = [1, 1]} : vector<3x16xf32> to vector<1x16xf32>
    %48 = vector.extract_strided_slice %29 {offsets = [1, 0], sizes = [1, 16], strides = [1, 1]} : vector<3x16xf32> to vector<1x16xf32>
    %49 = vector.extract_strided_slice %42 {offsets = [1, 0], sizes = [1, 16], strides = [1, 1]} : vector<3x16xf32> to vector<1x16xf32>
    %50 = vector.extract_strided_slice %7 {offsets = [1, 0], sizes = [1, 16], strides = [1, 1]} : vector<3x16xf32> to vector<1x16xf32>
    %51 = vector.extract_strided_slice %42 {offsets = [2, 0], sizes = [1, 16], strides = [1, 1]} : vector<3x16xf32> to vector<1x16xf32>
    %52 = vector.extract_strided_slice %39 {offsets = [1, 0], sizes = [1, 16], strides = [1, 1]} : vector<3x16xf32> to vector<1x16xf32>
    %53 = vector.extract_strided_slice %29 {offsets = [2, 0], sizes = [1, 16], strides = [1, 1]} : vector<3x16xf32> to vector<1x16xf32>
    %54 = vector.extract_strided_slice %7 {offsets = [2, 0], sizes = [1, 16], strides = [1, 1]} : vector<3x16xf32> to vector<1x16xf32>
    %55 = tpu.concatenate %43, %44, %45, %46, %47, %48, %49, %50, %51, %52, %53, %54 in 0 : vector<1x16xf32>, vector<1x16xf32>, vector<1x16xf32>, vector<1x16xf32>, vector<1x16xf32>, vector<1x16xf32>, vector<1x16xf32>, vector<1x16xf32>, vector<1x16xf32>, vector<1x16xf32>, vector<1x16xf32>, vector<1x16xf32> -> vector<12x16xf32>
    %c0_9 = arith.constant 0 : index
    %c0_10 = arith.constant 0 : index
    %56 = vector.load %arg4[%c0_9, %c0_10] : memref<12x16xf32, #tpu.memory_space<vmem>>, vector<12x16xf32>
    tpu.vector_store %arg4[%c0_9, %c0_10], %55 {strides = array<i32>} : memref<12x16xf32, #tpu.memory_space<vmem>>, vector<12x16xf32>,
    return
  }
  func.func @transform_0(%arg0: i32) -> (i32, i32) {
    %c0_i32 = arith.constant 0 : i32
    %c0_i32_0 = arith.constant 0 : i32
    return %arg0, %c0_i32 : i32, i32
  }
  func.func @transform_1(%arg0: i32) -> (i32, i32) {
    %c0_i32 = arith.constant 0 : i32
    %c0_i32_0 = arith.constant 0 : i32
    %c0_i32_1 = arith.constant 0 : i32
    return %c0_i32, %c0_i32_0 : i32, i32
  }
  func.func @transform_2(%arg0: i32) -> (i32, i32) {
    %c0_i32 = arith.constant 0 : i32
    %c0_i32_0 = arith.constant 0 : i32
    %c0_i32_1 = arith.constant 0 : i32
    return %c0_i32, %c0_i32_0 : i32, i32
  }
  func.func @transform_3(%arg0: i32) -> (i32, i32) {
    %c0_i32 = arith.constant 0 : i32
    %c0_i32_0 = arith.constant 0 : i32
    return %c0_i32, %arg0 : i32, i32
  }
}

</mosaic_0001>

<bundles_post_ra>
// kernel: tpu_custom_call.1
= control target key start
LH: loop header
LB: loop body
LE: loop exit
PB: predicated region body
PF: predicated region fallthrough
CT: control target
= control target key end

     0   :  { %8 = vsyncpa [#allocation3], 0  ;;  %s285_s0 = inlined_call_operand.hbm [shape: f32[16,32], index: 0, kind: input, shape index: {}]   ;;  %s286_s1 = inlined_call_operand.vmem [shape: f32[6,32], index: 1, kind: input, shape index: {}]   ;;  %s287_s2 = inlined_call_operand.vmem [shape: f32[6,1], index: 2, kind: input, shape index: {}]   ;;  %s288_s3 = inlined_call_operand.hbm [shape: f32[12,16], index: 3, kind: output, shape index: {}]  }
   0x1   :  { %9 = vsyncpa [#allocation4], 0  ;;  %s14_s14 = sshll.u32 %s285_s0, 4  ;;  %s225_s15 = smov [#allocation2]   ;;  %s15_s14 = int_to_ptr.hbm [resolvable:$true] %s14_s14 }
   0x2   :  { %s16_s16 = sshll.u32 %s225_s15, 4  ;;  %s226_s17 = smov 128   ;;  %s17_s16 = int_to_ptr.vmem [resolvable:$true] %s16_s16 }
   0x3   :  { %s227_s18 = smov 8  }
   0x4   :  { %22 = dma.hbm_to_vmem [thread:$0]  %s15_s14, 256, %s17_s16, [#allocation3], %s226_s17, %s226_s17, %s227_s18  }
   0x5   :  { %221 = dma.done.wait [#allocation3], 256  }
   0x6   :  { %222 = vsyncadd [#allocation3], 4294967040  ;;  %v228_v0 = vmov 0   ;;  %vm40_vm0 = vcmask 261120   ;;  %v33_v1 = vld [vmem:[#allocation2 + $0x8] sm:$0xff]  ;;  %v32_v3 = vld [vmem:[#allocation2] sm:$0xff] }
   0x7   :  { %170 = vset.pattern.permute.xlu0 %v228_v0  ;;  %162 = vmatpush.xpose.msk.msra.mxu0 %vm40_vm0, %v33_v1  ;;  %v34_v2 = vld [vmem:[%s287_s2] sm:$0x3f]  ;;  %vm95_vm1 = vcmask 1041408   ;;  %vm101_vm2 = vcmask 1040384   ;;  %vm126_vm3 = vcmask 1042432   ;;  %vm128_vm4 = vcmask 1043456  }
   0x8   :  { %37 = vperm.xlu0 %170, %v34_v2   ;;  %v31_v4 = vld [vmem:[%s286_s1] sm:$0x3f]  ;;  %vm141_vm5 = vcmask 125952   ;;  %vm130_vm6 = vcmask 1044480   ;;  %vm132_vm7 = vcmask 1045504   ;;  %s229_s1 = smov [#allocation5]  }
   0x9   :  { %s147_s2 = sshll.u32 %s229_s1, 4  ;;  %s149_s24 = sshll.u32 %s288_s3, 4  ;;  %vm134_vm8 = vcmask 1046528   ;;  %vm139_vm9 = vcmask 130048   ;;  %s148_s2 = int_to_ptr.vmem [resolvable:$true] %s147_s2  ;;  %s150_s24 = int_to_ptr.hbm [resolvable:$true] %s149_s24 }
   0xb   :  { %163 = vmatpush.xpose.msk.msra.mxu0 %vm40_vm0, %v32_v3 }
   0xe   :  { %164 = vmatmul.msk.f32.vlgmr.msra.gmra.mxu0 %vm40_vm0, %v31_v4 }
  0x7a   :  { %v38_v5 = vpop.permute.xlu0 %37 }
  0x8b   :  { %v67_v6 = vpop.f32.mrf.mxu0 }
  0x8c   :  { %v262_v7 = vadd.f32 %v67_v6, %v38_v5 }
  0x8e   :  { %v70_v8 = vmul.f32 %v262_v7, %v262_v7  ;;  %v91_v14 = vrot.slane %v262_v7, 1  ;;  %v93_v15 = vrot.slane %v262_v7, 6  ;;  %v97_v21 = vrot.slane %v262_v7, 2 }
  0x8f   :  { %v99_v22 = vrot.slane %v262_v7, 7  ;;  %v120_v49 = vrot.slane %v262_v7, 5 }
  0x90   :  { %v72_v9 = vrot.slane %v70_v8, 1  ;;  %v75_v11 = vrot.slane %v70_v8, 2  ;;  %v96_v18 = vsel %vm95_vm1, %v91_v14, %v93_v15  ;;  %v84_v28 = vmul.f32 2.0, %v70_v8 }
  0x91   :  { %v103_v24 = vmul.f32 %v96_v18, %v262_v7  ;;  %v102_v27 = vsel %vm101_vm2, %v97_v21, %v99_v22 }
  0x92   :  { %v74_v10 = vadd.f32 %v72_v9, %v70_v8 }
  0x93   :  { %v107_v31 = vsub.f32 %v103_v24, %v102_v27  ;;  %v104_v32 = vadd.f32 %v103_v24, %v102_v27 }
  0x94   :  { %v77_v12 = vadd.f32 %v75_v11, %v74_v10 }
  0x96   :  { %v78_v13 = vadd.f32 1.0, %v77_v12  ;;  %v85_v20 = vsub.f32 1.0, %v77_v12 }
  0x98   :  { %171 = vrcp.f32 %v78_v13  ;;  %v86_v26 = vperm.slane %v85_v20, 0 }
  0x9a   :  { %v87_v33 = vadd.f32 %v86_v26, %v84_v28 }
  0x9e   :  { %v172_v16 = vpop.eup %171 }
  0x9f   :  { %v80_v17 = vmul.f32 %v172_v16, %v78_v13 }
  0xa1   :  { %v81_v19 = vsub.f32 2.0, %v80_v17 }
  0xa3   :  { %v82_v23 = vmul.f32 %v172_v16, %v81_v19 }
  0xa5   :  { %v83_v25 = vadd.f32 %v82_v23, %v82_v23  ;;  %v88_v29 = vperm.slane %v82_v23, 0 }
  0xa7   :  { %v105_v30 = vperm.slane %v83_v25, 0  ;;  %v89_v36 = vmul.f32 %v88_v29, %v87_v33 }
  0xa9   :  { %v108_v34 = vmul.f32 %v107_v31, %v105_v30  ;;  %v106_v35 = vmul.f32 %v105_v30, %v104_v32  ;;  %v116_v44 = vrot.slane %v89_v36, 4 }
  0xab   :  { %v110_v37 = vrot.slane %v108_v34, 7  ;;  %v122_v38 = vrot.slane %v108_v34, 2  ;;  %v113_v41 = vrot.slane %v106_v35, 4  ;;  %v118_v47 = vrot.slane %v108_v34, 3 }
  0xad   :  { %v124_v39 = vsel %vm101_vm2, %v89_v36, %v110_v37  ;;  %v136_v40 = vsel %vm101_vm2, %v122_v38, %v106_v35 }
  0xae   :  { %v125_v42 = vsel %vm95_vm1, %v124_v39, %v106_v35  ;;  %v137_v43 = vsel %vm95_vm1, %v136_v40, %v89_v36 }
  0xaf   :  { %v127_v45 = vsel %vm126_vm3, %v125_v42, %v262_v7  ;;  %v138_v46 = vsel %vm126_vm3, %v137_v43, %v97_v21 }
  0xb0   :  { %v129_v48 = vsel %vm128_vm4, %v127_v45, %v113_v41  ;;  %142 = vst.msk [vmem:[#allocation5 + $0x8] sm:$0xf] %vm141_vm5, %v138_v46 }
  0xb1   :  { %v131_v50 = vsel %vm130_vm6, %v129_v48, %v116_v44 }
  0xb2   :  { %v133_v51 = vsel %vm132_vm7, %v131_v50, %v118_v47 }
  0xb3   :  { %v135_v52 = vsel %vm134_vm8, %v133_v51, %v120_v49 }
  0xb4   :  { %140 = vst.msk [vmem:[#allocation5] sm:$0xff] %vm139_vm9, %v135_v52 }
  0xb5   :  { %155 = dma.vmem_to_hbm [thread:$0]  %s148_s2, 256, %s150_s24, [#allocation4], %s226_s17, %s226_s17, %s227_s18  }
  0xb6   :  { %223 = dma.done.wait [#allocation4], 256  }
  0xb7   :  { %224 = vsyncadd [#allocation4], 4294967040 }
  0xb8   :  { %160 = vsyncpa [#allocation3], 1 }
  0xb9   :  { %161 = vsyncpa [#allocation4], 1 }

</bundles_post_ra>
